<compile_context>
chip_gen: v7x
topology: tpu7x:2x2x1
jax: 0.10.0
libtpu: 0.0.40
codegen_flags: <defaults>
</compile_context>

<pallas_src>
import functools

import jax
import jax.numpy as jnp
from jax.experimental import pallas as pl
from jax.experimental.pallas import tpu as pltpu


_VMEM_LIMIT_BYTES = 48 * 1024 * 1024    # explicit scoped-VMEM cap (v7x-safe)
_BLOCK_BUDGET_BYTES = 40 * 1024 * 1024  # what tile selection may consume


def _round_up(v, m):
    return (v + m - 1) // m * m


# ---------------------------------------------------------------------------
# Pass 1: chunk-sum reduction.  x[B, C, D] -> x_sum[B, D] (f32); x read once.
# ---------------------------------------------------------------------------
def _chunk_sum_kernel(x_ref, xsum_ref):
    c = pl.program_id(1)

    @pl.when(c == 0)
    def _():
        xsum_ref[...] = jnp.zeros_like(xsum_ref)

    # Chunk axis is the sublane (second-to-last) dim -> XLU/VPU reduction; the
    # output block is resident across the chunk axis (accumulator pattern).
    # TODO(synk): for D << 128 a lane-dense fold of the flat [B, C*D] layout
    # (pltpu.roll-based) would cut VMEM/VPU lane waste by up to 128/D.
    xsum_ref[...] += jnp.sum(x_ref[...].astype(jnp.float32), axis=1)


def _pass1_step_bytes(tb, cb, d, itemsize):
    """Accounted VMEM for one pass-1 grid step, with (8,128) padding."""
    x_blk = tb * _round_up(cb, 8) * _round_up(d, 128) * itemsize * 2   # dbl-buf
    o_blk = _round_up(tb, 8) * _round_up(d, 128) * 4 * 2               # f32 acc
    return x_blk + o_blk


def _batch_tile_candidates(B):
    divs8 = [tb for tb in range(8, B + 1, 8) if B % tb == 0]
    # Prefer >=2 batch tiles when possible so v7x's two TensorCores can split
    # the "parallel" batch axis without duplicating x reads.
    pref = sorted([tb for tb in divs8 if tb <= B // 2], reverse=True)
    rest = sorted([tb for tb in divs8 if tb > B // 2], reverse=True)
    cands = pref + rest
    if B not in cands:
        cands.append(B)
    return cands


def _chunk_tile_candidates(C):
    divs8 = sorted([cb for cb in range(8, C, 8) if C % cb == 0], reverse=True)
    return [C] + divs8


def _pick_pass1_tiles(B, C, D, itemsize, budget=_BLOCK_BUDGET_BYTES):
    for tb in _batch_tile_candidates(B):
        for cb in _chunk_tile_candidates(C):
            if _pass1_step_bytes(tb, cb, D, itemsize) <= budget:
                return tb, cb
    # TODO(synk): support non-divisor chunk tiles via a masked partial last
    # block instead of failing for awkward (huge / prime-ish) C, D, B.
    raise ValueError(
        f"No (batch, chunk) tile for B={B}, C={C}, D={D} fits the "
        f"{budget // (1024 * 1024)} MiB VMEM budget.")


# ---------------------------------------------------------------------------
# Pass 2: out[B, H] = x_sum @ (W / C) + b, tiled over a lane-dense H axis.
# ---------------------------------------------------------------------------
def _matmul_bias_kernel(xs_ref, w_ref, b_ref, o_ref, *, mxu_dtype):
    acc = jnp.dot(xs_ref[...].astype(mxu_dtype), w_ref[...],
                  preferred_element_type=jnp.float32)
    o_ref[...] = (acc + b_ref[...].astype(jnp.float32)).astype(o_ref.dtype)


def _pick_h_tile(B, D, H_pad, w_itemsize, out_itemsize,
                 budget=_BLOCK_BUDGET_BYTES):
    xs_bytes = _round_up(B, 8) * _round_up(D, 128) * 4 * 2     # resident x_sum
    ht = min(H_pad, 512)                                        # v5e-friendly cap
    while ht >= 128:
        if H_pad % ht == 0:
            w_bytes = _round_up(D, 8) * ht * w_itemsize * 2
            b_bytes = 8 * ht * 4 * 2
            o_bytes = _round_up(B, 8) * ht * out_itemsize * 2
            if xs_bytes + w_bytes + b_bytes + o_bytes <= budget:
                return ht
        ht -= 128
    # TODO(synk): tile the K (input_size) axis of the matmul for very large D/B.
    raise ValueError(
        f"No H tile for B={B}, D={D}, H_pad={H_pad} fits the VMEM budget.")


# ---------------------------------------------------------------------------
# Wrapper
# ---------------------------------------------------------------------------
def fusion_forward(x, w, b, input_size, *, mxu_dtype=None):
    """FusionModel forward.  x: [B, C*input_size], w: [input_size, H], b: [H]."""
    B, total = x.shape
    D, H = w.shape
    assert D == input_size and total % input_size == 0
    C = total // input_size
    if mxu_dtype is None:
        # For production on v6e/v7x pass mxu_dtype=jnp.bfloat16 (accumulation
        # stays f32 via preferred_element_type); widens tolerance vs reference.
        mxu_dtype = w.dtype
    x_itemsize = jnp.dtype(x.dtype).itemsize
    w_itemsize = jnp.dtype(mxu_dtype).itemsize
    out_itemsize = x_itemsize

    # Fold the 1/C of the chunk mean into W once (bias is unaffected) and pad
    # H to a lane-dense multiple of 128 (weights/bias only; x is untouched).
    H_pad = _round_up(H, 128)
    w_scaled = (w.astype(jnp.float32) * (1.0 / C)).astype(mxu_dtype)
    if H_pad != H:
        w_scaled = jnp.pad(w_scaled, ((0, 0), (0, H_pad - H)))
        b = jnp.pad(b, (0, H_pad - H))
    b2 = b.reshape(1, H_pad)

    # ---- Pass 1: x_sum[i, d] = sum_c x[i, c, d]  (x streamed exactly once) --
    x3 = x.reshape(B, C, D)                    # metadata-only reshape
    TB, CB = _pick_pass1_tiles(B, C, D, x_itemsize)
    n_b, n_c = B // TB, C // CB

    x_sum = pl.pallas_call(
        _chunk_sum_kernel,
        out_shape=jax.ShapeDtypeStruct((B, D), jnp.float32),
        grid_spec=pltpu.PrefetchScalarGridSpec(
            num_scalar_prefetch=0,
            grid=(n_b, n_c),                   # reduction (chunk) axis last
            in_specs=[pl.BlockSpec((TB, CB, D), lambda i, c: (i, c, 0))],
            out_specs=pl.BlockSpec((TB, D), lambda i, c: (i, 0)),
        ),
        compiler_params=pltpu.CompilerParams(
            dimension_semantics=("parallel", "arbitrary"),
            vmem_limit_bytes=_VMEM_LIMIT_BYTES,
        ),
    )(x3)

    # ---- Pass 2: out = x_sum @ (W/C) + b, H-tiled ("parallel" for megacore) -
    HT = _pick_h_tile(B, D, H_pad, w_itemsize, out_itemsize)
    n_h = H_pad // HT

    out = pl.pallas_call(
        functools.partial(_matmul_bias_kernel, mxu_dtype=mxu_dtype),
        out_shape=jax.ShapeDtypeStruct((B, H_pad), x.dtype),
        grid_spec=pltpu.PrefetchScalarGridSpec(
            num_scalar_prefetch=0,
            grid=(n_h,),
            in_specs=[
                pl.BlockSpec((B, D), lambda h: (0, 0)),    # resident x_sum
                pl.BlockSpec((D, HT), lambda h: (0, h)),   # weight tile
                pl.BlockSpec((1, HT), lambda h: (0, h)),   # bias tile
            ],
            out_specs=pl.BlockSpec((B, HT), lambda h: (0, h)),
        ),
        compiler_params=pltpu.CompilerParams(
            dimension_semantics=("parallel",),
            vmem_limit_bytes=_VMEM_LIMIT_BYTES,
        ),
    )(x_sum, w_scaled, b2)

    return out[:, :H] if H_pad != H else out


def reference_forward(x, w, b, input_size):
    """Pure-JAX reference mirroring the PyTorch forward exactly."""
    B, total = x.shape
    C = total // input_size
    chunks = jnp.split(x, C, axis=1)
    processed = [chunk @ w + b for chunk in chunks]
    stacked = jnp.stack(processed, axis=1)          # [B, C, H]
    return jnp.mean(stacked, axis=1)                # [B, H]


if __name__ == "__main__":
    key = jax.random.PRNGKey(0)
    k_x, k_w, k_b = jax.random.split(key, 3)

    batch = 2
    input_size = 32
    num_chunks = 4
    hidden = 32

    x = jax.random.normal(k_x, (batch, num_chunks * input_size), dtype=jnp.float32)
    # deterministic synthetic base_model (nn.Linear) parameters
    w = jax.random.normal(k_w, (input_size, hidden), dtype=jnp.float32) * 0.05
    b = jax.random.normal(k_b, (hidden,), dtype=jnp.float32) * 0.05

    out = fusion_forward(x, w, b, input_size)
    out = jax.block_until_ready(out)

    ref = reference_forward(x, w, b, input_size)
    assert out.shape == (batch, hidden)
    assert jnp.allclose(out, ref, atol=1e-5, rtol=1e-5), "mismatch vs reference"

    print("KERNEL_OK")
</pallas_src>

<mosaic_0001>
module attributes {stable_mosaic.version = 11 : i64} {
  func.func @_chunk_sum_kernel(%arg0: i32, %arg1: i32, %arg2: memref<2x4x32xf32, #tpu.memory_space<vmem>>, %arg3: memref<2x32xf32, #tpu.memory_space<vmem>>) attributes {dimension_semantics = [#tpu.dimension_semantics<parallel>, #tpu.dimension_semantics<arbitrary>], iteration_bounds = array<i64: 1, 1>, scalar_prefetch = 0 : i64, scratch_operands = 0 : i64, tpu.core_type = #tpu.core_type<tc>, window_params = [{transform_indices = @transform_0, window_bounds = array<i64: 2, 4, 32>}, {transform_indices = @transform_1, window_bounds = array<i64: 2, 32>}]} {
    %c0_i32 = arith.constant 0 : i32
    %0 = arith.cmpi eq, %arg1, %c0_i32 : i32
    %1 = arith.extui %0 : i1 to i32
    %c0_i32_0 = arith.constant 0 : i32
    %2 = arith.cmpi ne, %1, %c0_i32_0 : i32
    scf.if %2 {
      %cst_7 = arith.constant 0.000000e+00 : f32
      %8 = vector.broadcast %cst_7 : f32 to vector<2x32xf32>
      %c0_8 = arith.constant 0 : index
      %c0_9 = arith.constant 0 : index
      %9 = vector.load %arg3[%c0_8, %c0_9] : memref<2x32xf32, #tpu.memory_space<vmem>>, vector<2x32xf32>
      tpu.vector_store %arg3[%c0_8, %c0_9], %8 {strides = array<i32>} : memref<2x32xf32, #tpu.memory_space<vmem>>, vector<2x32xf32>,
    } else {
    }
    %c0 = arith.constant 0 : index
    %c0_1 = arith.constant 0 : index
    %3 = vector.load %arg3[%c0, %c0_1] : memref<2x32xf32, #tpu.memory_space<vmem>>, vector<2x32xf32>
    %c0_2 = arith.constant 0 : index
    %c0_3 = arith.constant 0 : index
    %c0_4 = arith.constant 0 : index
    %4 = vector.load %arg2[%c0_2, %c0_3, %c0_4] : memref<2x4x32xf32, #tpu.memory_space<vmem>>, vector<2x4x32xf32>
    %cst = arith.constant dense<0.000000e+00> : vector<2x32xf32>
    %5 = vector.multi_reduction <add>, %4, %cst [1] : vector<2x4x32xf32> to vector<2x32xf32>
    %6 = arith.addf %3, %5 : vector<2x32xf32>
    %c0_5 = arith.constant 0 : index
    %c0_6 = arith.constant 0 : index
    %7 = vector.load %arg3[%c0_5, %c0_6] : memref<2x32xf32, #tpu.memory_space<vmem>>, vector<2x32xf32>
    tpu.vector_store %arg3[%c0_5, %c0_6], %6 {strides = array<i32>} : memref<2x32xf32, #tpu.memory_space<vmem>>, vector<2x32xf32>,
    return
  }
  func.func @transform_0(%arg0: i32, %arg1: i32) -> (i32, i32, i32) {
    %c0_i32 = arith.constant 0 : i32
    %c0_i32_0 = arith.constant 0 : i32
    return %arg0, %arg1, %c0_i32 : i32, i32, i32
  }
  func.func @transform_1(%arg0: i32, %arg1: i32) -> (i32, i32) {
    %c0_i32 = arith.constant 0 : i32
    %c0_i32_0 = arith.constant 0 : i32
    return %arg0, %c0_i32 : i32, i32
  }
}

</mosaic_0001>

<bundles_post_ra>
// kernel: tpu_custom_call.1
= control target key start
LH: loop header
LB: loop body
LE: loop exit
PB: predicated region body
PF: predicated region fallthrough
CT: control target
= control target key end

     0   :  { %6 = vsyncpa [#allocation3], 0  ;;  %s164_s0 = inlined_call_operand.hbm [shape: f32[2,4,32], index: 0, kind: input, shape index: {}]   ;;  %s165_s1 = inlined_call_operand.hbm [shape: f32[2,32], index: 1, kind: output, shape index: {}]  }
   0x1   :  { %7 = vsyncpa [#allocation4], 0  ;;  %s123_s6 = smov [#allocation2]   ;;  %s75_s10 = scalar_lea.hbm %s164_s0, 128 }
   0x2   :  { %s13_s7 = sshll.u32 %s123_s6, 4  ;;  %p76_p0 = scmp.ne.s32.totalorder %s164_s0, %s75_s10  ;;  %s14_s7 = int_to_ptr.vmem [resolvable:$true] %s13_s7 }
   0x3   :  { %p79_p1 = scmp.lt.u32.totalorder %s75_s10, %s164_s0 }
   0x5   :  { %p81_p2 = pnand %p79_p1, %p76_p0 }
   0x7   :  { %84 = shalt.err (!%p81_p2)
}
   0x8   :  { %s85_s15 = scalar_lea.vmem %s14_s7, 128  ;;  %p90_p4 = scmp.lt.s32.totalorder %s14_s7, %s14_s7 }
   0x9   :  { %p86_p3 = scmp.ne.s32.totalorder %s14_s7, %s85_s15  ;;  %p91_p5 = scmp.lt.s32.totalorder %s85_s15, %s85_s15 }
   0xb   :  { %p92_p6 = por %p91_p5, %p90_p4 }
   0xd   :  { %p93_p7 = pnand %p92_p6, %p86_p3 }
   0xf   :  { %96 = shalt.err (!%p93_p7)
}
  0x10   :  { %s124_s16 = smov 64   ;;  %s125_s17 = smov 4  }
  0x11   :  { %19 = dma.hbm_to_vmem [thread:$0]  %s164_s0, 128, %s14_s7, [#allocation3], %s124_s16, %s124_s16, %s125_s17  }
  0x12   :  { %119 = dma.done.wait [#allocation3], 128  }
  0x13   :  { %120 = vsyncadd [#allocation3], 4294967168  ;;  %vm27_vm0 = vcmask 254976   ;;  %v126_v0 = vmov 0.0   ;;  %vm32_vm1 = vcmask 257024   ;;  %vm49_vm2 = vcmask 1041409  }
  0x14   :  { %28 = vst.msk [vmem:[#allocation5] sm:$0x3] %vm27_vm0, %v126_v0  ;;  %v30_v1 = vld [vmem:[#allocation2] sm:$0xf]  ;;  %v31_v2 = vld [vmem:[#allocation2 + $0x4] sm:$0xf] }
  0x15   :  { %v33_v3 = vsel %vm32_vm1, %v30_v1, 0.0  ;;  %v40_v4 = vsel %vm32_vm1, %v31_v2, 0.0  ;;  %s127_s0 = smov [#allocation5]  }
  0x16   :  { %v34_v5 = vrot.slane %v33_v3, 4  ;;  %v41_v6 = vrot.slane %v40_v4, 4  ;;  %s61_s20 = sshll.u32 %s127_s0, 4  ;;  %s62_s20 = int_to_ptr.vmem [resolvable:$true] %s61_s20 }
  0x17   :  { %s97_s21 = scalar_lea.vmem %s62_s20, 32  ;;  %p102_p9 = scmp.lt.s32.totalorder %s62_s20, %s62_s20 }
  0x18   :  { %v35_v7 = vadd.f32 %v34_v5, %v33_v3  ;;  %v42_v8 = vadd.f32 %v41_v6, %v40_v4  ;;  %p98_p8 = scmp.ne.s32.totalorder %s62_s20, %s97_s21  ;;  %p103_p10 = scmp.lt.s32.totalorder %s97_s21, %s97_s21 }
  0x1a   :  { %v36_v9 = vrot.slane %v35_v7, 2  ;;  %v43_v10 = vrot.slane %v42_v8, 2  ;;  %p104_p11 = por %p103_p10, %p102_p9 }
  0x1b   :  { %v29_v15 = vld [vmem:[#allocation5] sm:$0x3] }
  0x1c   :  { %v37_v11 = vadd.f32 %v36_v9, %v35_v7  ;;  %v44_v12 = vadd.f32 %v43_v10, %v42_v8  ;;  %p105_p12 = pnand %p104_p11, %p98_p8 }
  0x1e   :  { %v38_v13 = vrot.slane %v37_v11, 1  ;;  %v45_v14 = vrot.slane %v44_v12, 1 }
  0x20   :  { %v39_v16 = vadd.f32 %v38_v13, %v37_v11  ;;  %v46_v17 = vadd.f32 %v45_v14, %v44_v12 }
  0x22   :  { %v50_v18 = vsel %vm49_vm2, %v46_v17, %v39_v16 }
  0x23   :  { %v52_v19 = vadd.f32 %v50_v18, %v29_v15 }
  0x25   :  { %54 = vst.msk [vmem:[#allocation5] sm:$0x3] %vm27_vm0, %v52_v19 }
  0x26   :  { %108 = shalt.err (!%p105_p12)
}
  0x27   :  { %s109_s24 = scalar_lea.hbm %s165_s1, 32 }
  0x28   :  { %p110_p13 = scmp.ne.s32.totalorder %s165_s1, %s109_s24  ;;  %p113_p0 = scmp.lt.u32.totalorder %s109_s24, %s165_s1 }
  0x2a   :  { %p115_p1 = pnand %p113_p0, %p110_p13 }
  0x2c   :  { %118 = shalt.err (!%p115_p1)
}
  0x2d   :  { %64 = dma.vmem_to_hbm [thread:$0]  %s62_s20, 32, %s165_s1, [#allocation4]  }
  0x2e   :  { %121 = dma.done.wait [#allocation4], 32  }
  0x2f   :  { %122 = vsyncadd [#allocation4], 4294967264 }
  0x30   :  { %68 = vsyncpa [#allocation3], 1 }
  0x31   :  { %69 = vsyncpa [#allocation4], 1 }

</bundles_post_ra>
